<compile_context>
chip_gen: v6e
topology: v6e:2x2x1
jax: 0.10.0
libtpu: 0.0.40
codegen_flags: <defaults>
</compile_context>

<pallas_src>
import functools

import jax
import jax.numpy as jnp
import numpy as np
from jax import lax
from jax.experimental import pallas as pl
from jax.experimental.pallas import tpu as pltpu


def _ctc_kernel(blank_ref, e_ref, halo_ref, out_ref, *, seq_len, ragged):
    """One time-tile of greedy CTC: argmax over labels + collapse keep-mask.

    blank_ref: (1,)      SMEM scalar (blank label id), scalar prefetch.
    e_ref    : (TM, L)   logits in natural layout (contiguous HBM slab).
    halo_ref : (8, L)    rows [i*TM-8, i*TM) -- last row is the previous
                         tile's final time step (unused on tile 0).
    out_ref  : (1, TM)   packed int32:  idx | (keep << 16).
    """
    tm, nl = e_ref.shape
    blank = blank_ref[0]

    # ---- relayout: put time on the 128-wide lane axis (XLU, otherwise idle) ----
    e_t = jnp.transpose(e_ref[...])                                # (L, TM)

    # ---- argmax over labels (sublane reduce), first-max tie-break ----
    max_val = jnp.max(e_t, axis=0, keepdims=True)                  # (1, TM)
    label_iota = lax.broadcasted_iota(jnp.int32, (nl, tm), 0)
    idx = jnp.min(jnp.where(e_t == max_val, label_iota, nl),
                  axis=0, keepdims=True)                           # (1, TM) i32
    idx = jnp.minimum(idx, nl - 1)          # NaN guard (all-NaN column -> nl)

    # ---- unique_consecutive + blank removal as a keep mask ----
    prev = pltpu.roll(idx, shift=1, axis=1)         # prev[t] = idx[t-1]; lane 0 fixed below
    keep = (idx != blank) & (idx != prev)
    if ragged:                                       # last tile only pays if T % TM != 0
        lanes = lax.broadcasted_iota(jnp.int32, (1, tm), 1)
        keep = keep & ((pl.program_id(0) * tm + lanes) < seq_len)
    out_ref[...] = idx | (keep.astype(jnp.int32) << 16)            # lane-dense fused store

    # ---- lane-0 patch: previous tile's last argmax, recomputed from the halo ----
    hrow = halo_ref[7:8, :]                                        # (1, L) = step i*TM - 1
    hmax = jnp.max(hrow, axis=1, keepdims=True)
    hiota = lax.broadcasted_iota(jnp.int32, (1, nl), 1)
    hidx = jnp.min(jnp.where(hrow == hmax, hiota, nl), axis=1, keepdims=True)
    hidx = jnp.minimum(hidx, nl - 1)
    prev0 = jnp.where(pl.program_id(0) == 0, -1, hidx)             # tile 0: no previous step
    idx0 = idx[:, 0:1]
    keep0 = (idx0 != blank) & (idx0 != prev0)
    out_ref[:, 0:1] = idx0 | (keep0.astype(jnp.int32) << 16)       # single-element fixup


@functools.partial(jax.jit, static_argnames=("block_t",))
def ctc_greedy_packed(emission, blank=0, *, block_t=16384):
    """Run the Pallas kernel. Returns packed int32 of shape (1, T)."""
    T, L = emission.shape
    if T <= block_t:
        TM = T                                  # single tile: block == full extent
    else:
        TM = max((block_t // 128) * 128, 128)   # lane-dense tiles, multiple of 128
    num_tiles = pl.cdiv(T, TM)

    blank_arr = jnp.reshape(jnp.asarray(blank, jnp.int32), (1,))

    grid_spec = pltpu.PrefetchScalarGridSpec(
        num_scalar_prefetch=1,
        grid=(num_tiles,),
        in_specs=[
            # Main slab: contiguous (TM, L) rows of the natural layout.
            pl.BlockSpec((TM, L), lambda i, blank_ref: (i, 0)),
            # Halo: 8 rows ending at time i*TM - 1 (clamped to 0 for tile 0).
            pl.BlockSpec((8, L),
                         lambda i, blank_ref: (jnp.maximum(i * (TM // 8) - 1, 0), 0)),
        ],
        out_specs=pl.BlockSpec((1, TM), lambda i, blank_ref: (0, i)),
    )
    kernel = functools.partial(_ctc_kernel, seq_len=T, ragged=(T % TM) != 0)
    return pl.pallas_call(
        kernel,
        out_shape=jax.ShapeDtypeStruct((1, T), jnp.int32),
        grid_spec=grid_spec,
        compiler_params=pltpu.CompilerParams(
            # Tiles are independent (halo, no carry) -> parallel; lets v7x use
            # both TensorCores.  Raise scoped VMEM for big tiles (safe on v5e's
            # 16 MiB default, within v7x's 64 MiB physical VMEM).
            dimension_semantics=("parallel",),
            vmem_limit_bytes=32 * 1024 * 1024,
        ),
        cost_estimate=pl.CostEstimate(
            flops=8 * T * L, transcendentals=0,
            bytes_accessed=4 * T * L + 4 * T),
    )(blank_arr, emission, emission)


def packed_to_transcript(packed, labels):
    """Host-side: one D2H fetch, vectorized unpack, and join surviving labels."""
    row = np.asarray(jax.device_get(packed))[0]
    idx = row & 0xFFFF
    keep = (row >> 16).astype(bool)
    labels_arr = np.array(list(labels))
    # TODO(synk): string join has no Pallas equivalent (host-only op).
    return "".join(labels_arr[idx[keep]].tolist())


def greedy_ctc_decode(emission, labels, blank=0, *, block_t=16384):
    packed = ctc_greedy_packed(emission, blank, block_t=block_t)
    return packed_to_transcript(packed, labels)


def _reference_decode(emission, labels, blank=0):
    # Pure-numpy reference mirroring the PyTorch forward.
    e = np.asarray(jax.device_get(emission))
    indices = np.argmax(e, axis=-1)
    dedup = [indices[0]] + [indices[t] for t in range(1, len(indices))
                            if indices[t] != indices[t - 1]]
    return "".join(labels[int(i)] for i in dedup if i != blank)


if __name__ == "__main__":
    labels = "-abcdefghijklmnopqrstuvwxyz'.,?!"   # 32 labels, index 0 = blank
    assert len(labels) == 32

    key = jax.random.PRNGKey(0)
    k1, k2, k3 = jax.random.split(key, 3)

    # 1) Small single-tile case ([num_seq, num_label] like the PyTorch module).
    T, L = 16, 32
    emission = jax.random.normal(k1, (T, L), dtype=jnp.float32)
    packed = ctc_greedy_packed(emission, blank=0)
    jax.block_until_ready(packed)
    out = packed_to_transcript(packed, labels)
    ref = _reference_decode(emission, labels, blank=0)
    assert out == ref, f"mismatch: {out!r} vs {ref!r}"

    # 2) Multi-tile + ragged tail + halo/parallel path.  Logits built around a
    #    random label sequence so repeats and blanks actually exercise the
    #    CTC collapse.
    T2 = 300
    seq = jax.random.randint(k2, (T2,), 0, L)
    noise = 0.1 * jax.random.normal(k3, (T2, L), dtype=jnp.float32)
    emission2 = jax.nn.one_hot(seq, L, dtype=jnp.float32) * 2.0 + noise
    out2 = greedy_ctc_decode(emission2, labels, blank=0, block_t=128)
    ref2 = _reference_decode(emission2, labels, blank=0)
    assert out2 == ref2, f"mismatch: {out2!r} vs {ref2!r}"

    # 3) Exact-multiple multi-tile case (no ragged tail).
    emission3 = emission2[:256]
    out3 = greedy_ctc_decode(emission3, labels, blank=0, block_t=128)
    ref3 = _reference_decode(emission3, labels, blank=0)
    assert out3 == ref3, f"mismatch: {out3!r} vs {ref3!r}"

    print("KERNEL_OK")
</pallas_src>

<mosaic_0001>
module attributes {stable_mosaic.version = 11 : i64} {
  func.func @_ctc_kernel(%arg0: i32, %arg1: memref<1xi32, #tpu.memory_space<smem>>, %arg2: memref<16x32xf32, #tpu.memory_space<vmem>>, %arg3: memref<8x32xf32, #tpu.memory_space<vmem>>, %arg4: memref<1x16xi32, #tpu.memory_space<vmem>>) attributes {dimension_semantics = [#tpu.dimension_semantics<parallel>], iteration_bounds = array<i64: 1>, scalar_prefetch = 1 : i64, scratch_operands = 0 : i64, tpu.core_type = #tpu.core_type<tc>, window_params = [{transform_indices = @transform_0, window_bounds = array<i64: 16, 32>}, {transform_indices = @transform_1, window_bounds = array<i64: 8, 32>}, {transform_indices = @transform_2, window_bounds = array<i64: 1, 16>}]} {
    %c0 = arith.constant 0 : index
    %0 = memref.load %arg1[%c0] : memref<1xi32, #tpu.memory_space<smem>>
    %c0_0 = arith.constant 0 : index
    %c0_1 = arith.constant 0 : index
    %1 = vector.load %arg2[%c0_0, %c0_1] : memref<16x32xf32, #tpu.memory_space<vmem>>, vector<16x32xf32>
    %2 = tpu.transpose %1, [1, 0] : vector<16x32xf32> -> vector<32x16xf32>
    %cst = arith.constant dense<0xFF800000> : vector<16xf32>
    %3 = vector.multi_reduction <maximumf>, %2, %cst [0] : vector<32x16xf32> to vector<16xf32>
    %4 = vector.shape_cast %3 : vector<16xf32> to vector<1x16xf32>
    %5 = tpu.iota {dimensions = array<i32: 0>} : vector<32x16xi32>
    %6 = vector.broadcast %4 : vector<1x16xf32> to vector<32x16xf32>
    %7 = arith.cmpf oeq, %2, %6 : vector<32x16xf32>
    %c32_i32 = arith.constant 32 : i32
    %8 = vector.broadcast %c32_i32 : i32 to vector<32x16xi32>
    %9 = arith.select %7, %5, %8 : vector<32x16xi1>, vector<32x16xi32>
    %cst_2 = arith.constant dense<2147483647> : vector<16xi32>
    %10 = vector.multi_reduction <minsi>, %9, %cst_2 [0] : vector<32x16xi32> to vector<16xi32>
    %11 = vector.shape_cast %10 : vector<16xi32> to vector<1x16xi32>
    %c31_i32 = arith.constant 31 : i32
    %12 = vector.broadcast %c31_i32 : i32 to vector<1x16xi32>
    %13 = arith.minsi %11, %12 : vector<1x16xi32>
    %c1_i32 = arith.constant 1 : i32
    %14 = tpu.dynamic_rotate %13 by %c1_i32 dim 1 : vector<1x16xi32>, i32 -> vector<1x16xi32>
    %15 = vector.broadcast %0 : i32 to vector<1x16xi32>
    %16 = arith.cmpi ne, %13, %15 : vector<1x16xi32>
    %17 = arith.cmpi ne, %13, %14 : vector<1x16xi32>
    %18 = arith.andi %16, %17 : vector<1x16xi1>
    %19 = arith.extui %18 : vector<1x16xi1> to vector<1x16xi32>
    %c16_i32 = arith.constant 16 : i32
    %20 = vector.broadcast %c16_i32 : i32 to vector<1x16xi32>
    %21 = arith.shli %19, %20 : vector<1x16xi32>
    %22 = arith.ori %13, %21 : vector<1x16xi32>
    %c0_3 = arith.constant 0 : index
    %c0_4 = arith.constant 0 : index
    %23 = vector.load %arg4[%c0_3, %c0_4] : memref<1x16xi32, #tpu.memory_space<vmem>>, vector<1x16xi32>
    tpu.vector_store %arg4[%c0_3, %c0_4], %22 {strides = array<i32>} : memref<1x16xi32, #tpu.memory_space<vmem>>, vector<1x16xi32>,
    %c7 = arith.constant 7 : index
    %c0_5 = arith.constant 0 : index
    %24 = vector.load %arg3[%c7, %c0_5] : memref<8x32xf32, #tpu.memory_space<vmem>>, vector<1x32xf32>
    %cst_6 = arith.constant dense<0xFF800000> : vector<1xf32>
    %25 = vector.multi_reduction <maximumf>, %24, %cst_6 [1] : vector<1x32xf32> to vector<1xf32>
    %26 = vector.shape_cast %25 : vector<1xf32> to vector<1x1xf32>
    %27 = tpu.iota {dimensions = array<i32: 1>} : vector<1x32xi32>
    %28 = vector.broadcast %26 : vector<1x1xf32> to vector<1x32xf32>
    %29 = arith.cmpf oeq, %24, %28 : vector<1x32xf32>
    %c32_i32_7 = arith.constant 32 : i32
    %30 = vector.broadcast %c32_i32_7 : i32 to vector<1x32xi32>
    %31 = arith.select %29, %27, %30 : vector<1x32xi1>, vector<1x32xi32>
    %cst_8 = arith.constant dense<2147483647> : vector<1xi32>
    %32 = vector.multi_reduction <minsi>, %31, %cst_8 [1] : vector<1x32xi32> to vector<1xi32>
    %33 = vector.shape_cast %32 : vector<1xi32> to vector<1x1xi32>
    %c31_i32_9 = arith.constant 31 : i32
    %34 = vector.broadcast %c31_i32_9 : i32 to vector<1x1xi32>
    %35 = arith.minsi %33, %34 : vector<1x1xi32>
    %c0_i32 = arith.constant 0 : i32
    %36 = arith.cmpi eq, %arg0, %c0_i32 : i32
    %c-1_i32 = arith.constant -1 : i32
    %37 = vector.broadcast %c-1_i32 : i32 to vector<1x1xi32>
    %38 = arith.select %36, %37, %35 : vector<1x1xi32>
    %39 = vector.extract_strided_slice %13 {offsets = [0, 0], sizes = [1, 1], strides = [1, 1]} : vector<1x16xi32> to vector<1x1xi32>
    %40 = vector.broadcast %0 : i32 to vector<1x1xi32>
    %41 = arith.cmpi ne, %39, %40 : vector<1x1xi32>
    %42 = arith.cmpi ne, %39, %38 : vector<1x1xi32>
    %43 = arith.andi %41, %42 : vector<1x1xi1>
    %44 = arith.extui %43 : vector<1x1xi1> to vector<1x1xi32>
    %c16_i32_10 = arith.constant 16 : i32
    %45 = vector.broadcast %c16_i32_10 : i32 to vector<1x1xi32>
    %46 = arith.shli %44, %45 : vector<1x1xi32>
    %47 = arith.ori %39, %46 : vector<1x1xi32>
    %c0_11 = arith.constant 0 : index
    %c0_12 = arith.constant 0 : index
    %48 = vector.load %arg4[%c0_11, %c0_12] : memref<1x16xi32, #tpu.memory_space<vmem>>, vector<1x1xi32>
    tpu.vector_store %arg4[%c0_11, %c0_12], %47 {strides = array<i32>} : memref<1x16xi32, #tpu.memory_space<vmem>>, vector<1x1xi32>,
    return
  }
  func.func @transform_0(%arg0: i32, %arg1: memref<1xi32, #tpu.memory_space<smem>>) -> (i32, i32) {
    %c0_i32 = arith.constant 0 : i32
    %c0_i32_0 = arith.constant 0 : i32
    return %arg0, %c0_i32 : i32, i32
  }
  func.func @transform_1(%arg0: i32, %arg1: memref<1xi32, #tpu.memory_space<smem>>) -> (i32, i32) {
    %c2_i32 = arith.constant 2 : i32
    %0 = arith.muli %arg0, %c2_i32 : i32
    %c1_i32 = arith.constant 1 : i32
    %1 = arith.subi %0, %c1_i32 : i32
    %c0_i32 = arith.constant 0 : i32
    %2 = arith.maxsi %1, %c0_i32 : i32
    %c0_i32_0 = arith.constant 0 : i32
    %c0_i32_1 = arith.constant 0 : i32
    return %2, %c0_i32_0 : i32, i32
  }
  func.func @transform_2(%arg0: i32, %arg1: memref<1xi32, #tpu.memory_space<smem>>) -> (i32, i32) {
    %c0_i32 = arith.constant 0 : i32
    %c0_i32_0 = arith.constant 0 : i32
    return %c0_i32, %arg0 : i32, i32
  }
}

</mosaic_0001>

<bundles_post_ra>
// kernel: ctc_greedy_packed.1
= control target key start
LH: loop header
LB: loop body
LE: loop exit
PB: predicated region body
PF: predicated region fallthrough
CT: control target
= control target key end

     0   :  { %9 = vsyncpa [#allocation5], 0  ;;  %s330_s0 = inlined_call_operand.<no memory space> [shape: s32[1], index: 0, kind: input, shape index: {}]   ;;  %s331_s1 = inlined_call_operand.hbm [shape: f32[16,32], index: 1, kind: input, shape index: {}, may-alias: {1,2}]   ;;  %s332_s2 = inlined_call_operand.hbm [shape: f32[16,32], index: 2, kind: input, shape index: {}, may-alias: {1,2}]   ;;  %s333_s3 = inlined_call_operand.hbm [shape: s32[1,16], index: 3, kind: output, shape index: {}]  }
   0x1   :  { %10 = vsyncpa [#allocation8], 0 }
   0x2   :  { %11 = vsyncpa [#allocation6], 0  ;;  %s282_s12 = smov [#allocation4]  }
   0x3   :  { %s17_s13 = sshll.u32 %s282_s12, 4  ;;  %s18_s13 = int_to_ptr.vmem [resolvable:$true] %s17_s13 }
   0x4   :  { %s224_s14 = scalar_lea.vmem %s18_s13, 256  ;;  %p229_p1 = scmp.lt.s32.totalorder %s18_s13, %s18_s13 }
   0x5   :  { %p225_p0 = scmp.ne.s32.totalorder %s18_s13, %s224_s14  ;;  %p230_p2 = scmp.lt.s32.totalorder %s224_s14, %s224_s14 }
   0x7   :  { %p231_p3 = por %p230_p2, %p229_p1 }
   0x9   :  { %p232_p4 = pnand %p231_p3, %p225_p0 }
   0xb   :  { %235 = shalt.err (!%p232_p4)
}
   0xc   :  { %s283_s15 = smov 128   ;;  %s284_s16 = smov 8  }
   0xd   :  { %23 = dma.hbm_to_vmem [thread:$0]  %s331_s1, 256, %s18_s13, [#allocation5], %s283_s15, %s283_s15, %s284_s16  }
   0xe   :  { %s285_s19 = smov [#allocation7]  }
   0xf   :  { %s36_s20 = sshll.u32 %s285_s19, 4  ;;  %s37_s20 = int_to_ptr.vmem [resolvable:$true] %s36_s20 }
  0x10   :  { %s244_s21 = scalar_lea.vmem %s37_s20, 128  ;;  %p249_p6 = scmp.lt.s32.totalorder %s37_s20, %s37_s20 }
  0x11   :  { %p245_p5 = scmp.ne.s32.totalorder %s37_s20, %s244_s21  ;;  %p250_p7 = scmp.lt.s32.totalorder %s244_s21, %s244_s21 }
  0x13   :  { %p251_p8 = por %p250_p7, %p249_p6 }
  0x15   :  { %p252_p9 = pnand %p251_p8, %p245_p5 }
  0x17   :  { %255 = shalt.err (!%p252_p9)
}
  0x18   :  { %39 = dma.hbm_to_vmem [thread:$0]  %s332_s2, 128, %s37_s20, [#allocation8]  }
  0x19   :  { %276 = dma.done.wait [#allocation5], 256  }
  0x1a   :  { %277 = vsyncadd [#allocation5], 4294967040 }
  0x1b   :  { %278 = dma.done.wait [#allocation8], 128  }
  0x1c   :  { %279 = vsyncadd [#allocation8], 4294967168  ;;  %v51_v0 = vld [vmem:[#allocation4] sm:$0xff]  ;;  %v52_v1 = vld [vmem:[#allocation4 + $0x8] sm:$0xff]  ;;  %vm85_vm0 = vcmask 130048   ;;  %v99_v14 = vlaneseq  ;;  %s286_s1 = smov 16   ;;  %v140_v46 = vstv %s330_s0 }
  0x1d   :  { %53 = vxpose.xlu0.b32.start [1/2] (short) (narrow) %v51_v0, 32  ;;  %vm133_vm12 = vcmask 1047680   ;;  %s287_s2 = smov 113   ;;  %v288_v48 = vmov 0   ;;  %s289_s26 = smov [#allocation9]  }
  0x1e   :  { %v100_v17 = vshrl.u32 %v99_v14, 7  ;;  %s195_s27 = sshll.u32 %s289_s26, 4  ;;  %s196_s27 = int_to_ptr.vmem [resolvable:$true] %s195_s27 }
  0x1f   :  { %s256_s0 = scalar_lea.vmem %s196_s27, 16  ;;  %s260_s28 = scalar_lea.vmem %s196_s27, 32 }
  0x20   :  { %v101_v20 = vadd.s32 8, %v100_v17  ;;  %v102_v21 = vadd.s32 16, %v100_v17  ;;  %v103_v22 = vadd.s32 24, %v100_v17  ;;  %p257_p10 = scmp.ne.s32.totalorder %s196_s27, %s256_s0  ;;  %p261_p11 = scmp.lt.s32.totalorder %s196_s27, %s196_s27 }
  0x21   :  { %54 = vxpose.xlu0.b32.end [2/2] (short) (narrow) %v52_v1, 32  ;;  %p262_p12 = scmp.lt.s32.totalorder %s260_s28, %s256_s0 }
  0x23   :  { %p263_p13 = por %p262_p12, %p261_p11 }
  0x25   :  { %p264_p0 = pnand %p263_p13, %p257_p10 }
  0x99   :  { %v69_v2 = vpop.trf.xlu0 }
  0x9a   :  { %v86_v7 = vsel %vm85_vm0, %v69_v2, -inf }
  0x9d   :  { %v70_v3 = vpop.trf.xlu0 }
  0x9e   :  { %v87_v5 = vsel %vm85_vm0, %v70_v3, -inf }
  0x9f   :  { %v90_v10 = vmax.f32 %v86_v7, %v87_v5 }
  0xa1   :  { %v71_v4 = vpop.trf.xlu0 }
  0xa2   :  { %v88_v8 = vsel %vm85_vm0, %v71_v4, -inf }
  0xa5   :  { %v72_v6 = vpop.trf.xlu0 }
  0xa6   :  { %v89_v9 = vsel %vm85_vm0, %v72_v6, -inf }
  0xa7   :  { %v91_v11 = vmax.f32 %v88_v8, %v89_v9 }
  0xa9   :  { %v92_v12 = vmax.f32 %v90_v10, %v91_v11 }
  0xab   :  { %v93_v13 = vrot.slane %v92_v12, 4 }
  0xad   :  { %v94_v15 = vmax.f32 %v92_v12, %v93_v13 }
  0xaf   :  { %v95_v16 = vrot.slane %v94_v15, 2 }
  0xb1   :  { %v96_v18 = vmax.f32 %v94_v15, %v95_v16 }
  0xb3   :  { %v97_v19 = vrot.slane %v96_v18, 1 }
  0xb5   :  { %v98_v23 = vmax.f32 %v96_v18, %v97_v19 }
  0xb7   :  { %vm104_vm1 = vcmp.eq.f32.partialorder %v69_v2, %v98_v23  ;;  %vm105_vm2 = vcmp.eq.f32.partialorder %v70_v3, %v98_v23  ;;  %vm106_vm3 = vcmp.eq.f32.partialorder %v71_v4, %v98_v23  ;;  %vm107_vm4 = vcmp.eq.f32.partialorder %v72_v6, %v98_v23 }
  0xb8   :  { %v108_v24 = vsel %vm104_vm1, %v100_v17, 32  ;;  %v109_v25 = vsel %vm105_vm2, %v101_v20, 32  ;;  %v110_v26 = vsel %vm106_vm3, %v102_v21, 32  ;;  %v111_v27 = vsel %vm107_vm4, %v103_v22, 32 }
  0xb9   :  { %v112_v28 = vsel %vm85_vm0, %v108_v24, 2147483647  ;;  %v113_v29 = vsel %vm85_vm0, %v109_v25, 2147483647  ;;  %v114_v30 = vsel %vm85_vm0, %v110_v26, 2147483647 }
  0xba   :  { %v115_v31 = vsel %vm85_vm0, %v111_v27, 2147483647  ;;  %vm116_vm5 = vcmp.lt.s32.totalorder %v112_v28, %v113_v29  ;;  %vm149_vm2 = vcmask 122880   ;;  %vm187_vm3 = vcmask 0  }
  0xbb   :  { %v117_v32 = vsel %vm116_vm5, %v112_v28, %v113_v29  ;;  %vm118_vm6 = vcmp.lt.s32.totalorder %v114_v30, %v115_v31 }
  0xbc   :  { %v119_v33 = vsel %vm118_vm6, %v114_v30, %v115_v31 }
  0xbd   :  { %vm120_vm7 = vcmp.lt.s32.totalorder %v117_v32, %v119_v33 }
  0xbe   :  { %v121_v34 = vsel %vm120_vm7, %v117_v32, %v119_v33 }
  0xbf   :  { %v122_v35 = vrot.slane %v121_v34, 4 }
  0xc1   :  { %vm123_vm8 = vcmp.lt.s32.totalorder %v121_v34, %v122_v35 }
  0xc2   :  { %v124_v36 = vsel %vm123_vm8, %v121_v34, %v122_v35 }
  0xc3   :  { %v125_v37 = vrot.slane %v124_v36, 2 }
  0xc5   :  { %vm126_vm9 = vcmp.lt.s32.totalorder %v124_v36, %v125_v37 }
  0xc6   :  { %v127_v38 = vsel %vm126_vm9, %v124_v36, %v125_v37 }
  0xc7   :  { %v128_v39 = vrot.slane %v127_v38, 1 }
  0xc9   :  { %vm129_vm10 = vcmp.lt.s32.totalorder %v127_v38, %v128_v39 }
  0xca   :  { %v130_v40 = vsel %vm129_vm10, %v127_v38, %v128_v39 }
  0xcb   :  { %vm131_vm11 = vcmp.lt.s32.totalorder %v130_v40, 31 }
  0xcc   :  { %v132_v41 = vsel %vm131_vm11, %v130_v40, 31 }
  0xcd   :  { %134 = vrot.lane.b32.xlu1 %v132_v41, %s286_s1  ;;  %vm141_vm13 = vcmp.ne.s32.totalorder %v132_v41, %v140_v46  ;;  %vm182_vm14 = vcmp.ne.s32.totalorder %v132_v41, 4294967295 }
  0xce   :  { %vm183_vm15 = vmand %vm141_vm13, %vm182_vm14 }
  0xcf   :  { %v184_v49 = vsel %vm183_vm15, 1, %v288_v48 }
  0xd0   :  { %v185_v51 = vshll.u32 %v184_v49, 16 }
  0xd2   :  { %v186_v54 = vor.u32 %v185_v51, %v132_v41 }
 0x13f   :  { %v135_v42 = vpop.permute.xlu1 %134 }
 0x140   :  { %v136_v43 = vsel %vm133_vm12, %v135_v42, %v132_v41 }
 0x141   :  { %137 = vrot.lane.b32.xlu1 %v136_v43, %s286_s1 }
 0x1b3   :  { %v138_v44 = vpop.permute.xlu1 %137 }
 0x1b4   :  { %v139_v45 = vsel %vm133_vm12, %v138_v44, %v132_v41 }
 0x1b5   :  { %142 = vrot.lane.b32.xlu0 %v139_v45, %s287_s2 }
 0x227   :  { %v143_v47 = vpop.permute.xlu0 %142 }
 0x228   :  { %vm144_vm0 = vcmp.ne.s32.totalorder %v132_v41, %v143_v47 }
 0x229   :  { %vm145_vm1 = vmand %vm141_vm13, %vm144_vm0 }
 0x22a   :  { %v146_v50 = vsel %vm145_vm1, 1, %v288_v48 }
 0x22b   :  { %v147_v52 = vshll.u32 %v146_v50, 16 }
 0x22d   :  { %v148_v53 = vor.u32 %v147_v52, %v132_v41 }
 0x22f   :  { %150 = vst.msk [vmem:[#allocation9] sm:$0x1] %vm149_vm2, %v148_v53 }
 0x230   :  { %188 = vst.msk [vmem:[#allocation9] sm:$0x1] %vm187_vm3, %v186_v54 }
 0x231   :  { %267 = shalt.err (!%p264_p0)
}
 0x232   :  { %198 = dma.vmem_to_hbm [thread:$0]  %s196_s27, 16, %s333_s3, [#allocation6]  }
 0x233   :  { %280 = dma.done.wait [#allocation6], 16  }
 0x234   :  { %281 = vsyncadd [#allocation6], 4294967280 }
 0x235   :  { %202 = vsyncpa [#allocation5], 1 }
 0x236   :  { %203 = vsyncpa [#allocation8], 1 }
 0x237   :  { %204 = vsyncpa [#allocation6], 1 }

</bundles_post_ra>
